<compile_context>
chip_gen: v7x
topology: tpu7x:2x2x1
jax: 0.10.0
libtpu: 0.0.40
codegen_flags: <defaults>
</compile_context>

<pallas_src>
import functools
import numpy as np
import jax
import jax.numpy as jnp
from jax.experimental import pallas as pl
from jax.experimental.pallas import tpu as pltpu

_SIGNAL_VMEM_BUDGET = 4 << 20  # max bytes of per-(B*C) signal kept whole in VMEM


def _round_up(x, m):
    return ((x + m - 1) // m) * m


def _cdiv(a, b):
    return (a + b - 1) // b


def _pick_tile(total, desired, gran):
    """Largest multiple of `gran` that divides `total` (itself a multiple of
    gran) and is <= desired."""
    m = total // gran
    best = 1
    for d in range(1, m + 1):
        if m % d == 0 and d * gran <= desired:
            best = d
    return best * gran


@functools.lru_cache(maxsize=None)
def _dft_basis_np(n_fft):
    """Fused (periodic-Hann window * DFT) basis, repacked to exactly n_fft
    lane-dense columns:
      cols 0 .. n_fft-3 : (re_k, im_k) interleaved for bins k = 1 .. n_fft/2-1
      col  n_fft-2      : re_0        (DC, imag == 0)
      col  n_fft-1      : re_{n_fft/2} (Nyquist, imag == 0)
    """
    assert n_fft % 2 == 0, "even n_fft required (torch default usage)"
    n_bins = n_fft // 2 + 1
    n = np.arange(n_fft)
    w = 0.5 - 0.5 * np.cos(2.0 * np.pi * n / n_fft)          # periodic Hann
    k = np.arange(n_bins)
    ang = 2.0 * np.pi * np.outer(n, k) / n_fft                # (n_fft, n_bins)
    re = w[:, None] * np.cos(ang)
    im = -(w[:, None] * np.sin(ang))
    interior = np.stack([re[:, 1:n_bins - 1], im[:, 1:n_bins - 1]], axis=-1)
    interior = interior.reshape(n_fft, 2 * (n_bins - 2))
    basis = np.concatenate([interior, re[:, :1], re[:, n_bins - 1:n_bins]], axis=1)
    return basis.astype(np.float32)                           # (n_fft, n_fft)


def _make_stft_kernel(k, row_w, frame_tile, whole_signal, single_frame_tile):
    """k shifted (frame_tile, row_w) @ (row_w, bin_tile) MXU matmuls, f32 acc."""

    def kernel(x_ref, basis_ref, out_ref):
        # x_ref:     (1, rows, row_w)        bf16
        # basis_ref: (k*row_w, bin_tile)     bf16
        # out_ref:   (1, frame_tile, bin_tile) f32
        if whole_signal and not single_frame_tile:
            f0 = pl.program_id(2) * frame_tile     # frame offset inside signal
        else:
            f0 = 0                                  # static fast path
        acc = None
        for j in range(k):                          # static, small (n_fft//hop)
            xj = x_ref[0, pl.ds(f0 + j, frame_tile), :]
            bj = basis_ref[j * row_w:(j + 1) * row_w, :]
            d = jnp.dot(xj, bj, preferred_element_type=jnp.float32)
            acc = d if acc is None else acc + d
        out_ref[0] = acc

    return kernel


def stft_pallas(x, n_fft=256, n_hop=64, *, frame_tile=512, bin_tile=512):
    """x: (B, C, T) float32 -> (B, C, n_fft//2+1, n_frames, 2) float32.

    Matches torch.stft(center=False, onesided=True, normalized=False) with a
    periodic Hann window (torch.hann_window(n_fft)).
    """
    B, C, T = x.shape
    if T < n_fft:
        raise ValueError(f"T={T} must be >= n_fft={n_fft} for center=False")
    n_bins = n_fft // 2 + 1
    n_frames = 1 + (T - n_fft) // n_hop
    BC = B * C

    # ---- tile selection ----------------------------------------------------
    frame_tile = max(16, min(_round_up(frame_tile, 16), _round_up(n_frames, 16)))
    if BC == 1:
        # keep >= 2 parallel grid units for megacore when batch*channels == 1
        half = max(16, _round_up(_cdiv(n_frames, 2), 16))
        frame_tile = min(frame_tile, half)
    F_pad = _round_up(n_frames, frame_tile)
    F_tiles = F_pad // frame_tile

    N_pad = _round_up(n_fft, 128)                  # == n_fft for typical n_fft
    bin_tile = _pick_tile(N_pad, max(128, bin_tile), 128)
    N_tiles = N_pad // bin_tile

    # ---- fused basis (window + DFT + repack), cached per n_fft --------------
    basis_np = _dft_basis_np(n_fft)
    if N_pad > n_fft:
        basis_np = np.pad(basis_np, ((0, 0), (0, N_pad - n_fft)))
    basis = jnp.asarray(basis_np, dtype=jnp.bfloat16)

    # ---- input layout: in-kernel framing when hop | n_fft and it fits VMEM --
    x_flat = x.reshape(BC, T).astype(jnp.bfloat16)
    k_rows = n_fft // n_hop if n_fft % n_hop == 0 else 0
    whole_signal = False
    if k_rows > 0:
        rows_needed = F_pad + k_rows - 1
        n_rows_pad = _round_up(rows_needed, 16)
        if n_rows_pad * n_hop * 2 <= _SIGNAL_VMEM_BUDGET:
            whole_signal = True

    if whole_signal:
        k = k_rows
        row_w = n_hop
        total = n_rows_pad * n_hop
        sig = x_flat[:, :min(T, total)]
        sig = jnp.pad(sig, ((0, 0), (0, total - sig.shape[1])))
        x_in = sig.reshape(BC, n_rows_pad, row_w)             # (BC, rows, hop)
        x_block = (1, n_rows_pad, row_w)
        x_index = lambda b, ni, fi: (b, 0, 0)                 # whole signal per b
    else:
        # Fallback: frames built in glue, kernel degenerates to one matmul.
        k = 1
        row_w = n_fft
        if k_rows > 0:
            rows = T // n_hop
            xr = x_flat[:, :rows * n_hop].reshape(BC, rows, n_hop)
            frames = jnp.concatenate(
                [xr[:, j:j + n_frames, :] for j in range(k_rows)], axis=-1)
        else:
            # TODO(synk): hop not dividing n_fft -- gather framing (rare).
            idx = (jnp.arange(n_frames)[:, None] * n_hop
                   + jnp.arange(n_fft)[None, :])
            frames = x_flat[:, idx]
        frames = jnp.pad(frames, ((0, 0), (0, F_pad - n_frames), (0, 0)))
        x_in = frames                                         # (BC, F_pad, n_fft)
        x_block = (1, frame_tile, row_w)
        x_index = lambda b, ni, fi: (b, fi, 0)

    kernel = _make_stft_kernel(k, row_w, frame_tile, whole_signal, F_tiles == 1)

    # ---- VMEM budget / compiler params --------------------------------------
    x_bytes = x_block[1] * x_block[2] * 2
    basis_bytes = n_fft * bin_tile * 2
    out_bytes = frame_tile * bin_tile * 4
    vmem_need = 2 * (x_bytes + basis_bytes + out_bytes)       # double-buffered
    vmem_limit = None
    if vmem_need > (12 << 20):                                # v5e scoped default
        vmem_limit = int(min(vmem_need + (4 << 20), 48 << 20))

    cost = pl.CostEstimate(
        flops=int(2.0 * BC * F_pad * N_pad * n_fft),
        transcendentals=0,
        bytes_accessed=int(BC * x_in.shape[1] * x_in.shape[2] * 2
                           + n_fft * N_pad * 2
                           + BC * F_pad * N_pad * 4))

    grid = (BC, N_tiles, F_tiles)                             # frames innermost
    out = pl.pallas_call(
        kernel,
        out_shape=jax.ShapeDtypeStruct((BC, F_pad, N_pad), jnp.float32),
        grid_spec=pltpu.PrefetchScalarGridSpec(
            num_scalar_prefetch=0,
            grid=grid,
            in_specs=[
                pl.BlockSpec(x_block, x_index),
                pl.BlockSpec((n_fft, bin_tile), lambda b, ni, fi: (0, ni)),
            ],
            out_specs=pl.BlockSpec((1, frame_tile, bin_tile),
                                   lambda b, ni, fi: (b, fi, ni)),
        ),
        compiler_params=pltpu.CompilerParams(
            dimension_semantics=("parallel", "parallel", "parallel"),
            vmem_limit_bytes=vmem_limit),
        cost_estimate=cost,
    )(x_in, basis)

    # ---- unpack: minor (re, im) pair stays intact through the transpose -----
    y = out[:, :n_frames, :n_fft]                             # (BC, frames, n_fft)
    interior = y[..., :n_fft - 2].reshape(BC, n_frames, n_bins - 2, 2)
    dc = y[..., n_fft - 2:n_fft - 1]                          # (BC, frames, 1)
    nyq = y[..., n_fft - 1:n_fft]
    zeros = jnp.zeros_like(dc)
    dc_p = jnp.stack([dc, zeros], axis=-1)                    # (BC, frames, 1, 2)
    ny_p = jnp.stack([nyq, zeros], axis=-1)
    full = jnp.concatenate([dc_p, interior, ny_p], axis=2)    # (BC, frames, bins, 2)
    full = jnp.transpose(full, (0, 2, 1, 3))                  # (BC, bins, frames, 2)
    return full.reshape(B, C, n_bins, n_frames, 2)


def _ref_stft_numpy(x_np, n_fft, n_hop):
    """Reference via np.fft.rfft (matches torch.stft, center=False)."""
    B, C, T = x_np.shape
    n_bins = n_fft // 2 + 1
    n_frames = 1 + (T - n_fft) // n_hop
    w = 0.5 - 0.5 * np.cos(2.0 * np.pi * np.arange(n_fft) / n_fft)
    out = np.zeros((B, C, n_bins, n_frames, 2), np.float32)
    for b in range(B):
        for c in range(C):
            for f in range(n_frames):
                seg = x_np[b, c, f * n_hop:f * n_hop + n_fft] * w
                spec = np.fft.rfft(seg)
                out[b, c, :, f, 0] = spec.real
                out[b, c, :, f, 1] = spec.imag
    return out


if __name__ == "__main__":
    # Small shapes consistent with the module (scaled-down n_fft / hop).
    B, C, T = 2, 2, 1024
    n_fft, n_hop = 256, 64

    key = jax.random.PRNGKey(0)
    x = jax.random.normal(key, (B, C, T), dtype=jnp.float32)

    stft_fn = jax.jit(functools.partial(stft_pallas, n_fft=n_fft, n_hop=n_hop))
    out = jax.block_until_ready(stft_fn(x))

    # Sanity check against an FFT reference (tolerances sized for bf16 MXU
    # inputs on a 256-point DFT; real bugs produce O(1)-O(10) errors).
    ref = _ref_stft_numpy(np.asarray(x), n_fft, n_hop)
    assert out.shape == ref.shape, (out.shape, ref.shape)
    out_np = np.asarray(out)
    rel = float(np.linalg.norm(out_np - ref) / np.linalg.norm(ref))
    assert rel < 1e-2, rel
    assert np.allclose(out_np, ref, rtol=2e-2, atol=2.5e-1), (
        float(np.max(np.abs(out_np - ref))))

    print("KERNEL_OK")
</pallas_src>

<mosaic_0001>
module attributes {stable_mosaic.version = 11 : i64} {
  func.func @kernel(%arg0: i32, %arg1: i32, %arg2: i32, %arg3: memref<1x32x64xbf16, #tpu.memory_space<vmem>>, %arg4: memref<256x256xbf16, #tpu.memory_space<vmem>>, %arg5: memref<1x16x256xf32, #tpu.memory_space<vmem>>) attributes {dimension_semantics = [#tpu.dimension_semantics<parallel>, #tpu.dimension_semantics<parallel>, #tpu.dimension_semantics<parallel>], iteration_bounds = array<i64: 4, 1, 1>, scalar_prefetch = 0 : i64, scratch_operands = 0 : i64, tpu.core_type = #tpu.core_type<tc>, window_params = [{transform_indices = @transform_0, window_bounds = array<i64: 1, 32, 64>}, {transform_indices = @transform_1, window_bounds = array<i64: 256, 256>}, {transform_indices = @transform_2, window_bounds = array<i64: 1, 16, 256>}]} {
    %c0 = arith.constant 0 : index
    %c0_0 = arith.constant 0 : index
    %c0_1 = arith.constant 0 : index
    %0 = vector.load %arg3[%c0, %c0_0, %c0_1] : memref<1x32x64xbf16, #tpu.memory_space<vmem>>, vector<1x16x64xbf16>
    %1 = vector.shape_cast %0 : vector<1x16x64xbf16> to vector<16x64xbf16>
    %c0_2 = arith.constant 0 : index
    %c0_3 = arith.constant 0 : index
    %2 = vector.load %arg4[%c0_2, %c0_3] : memref<256x256xbf16, #tpu.memory_space<vmem>>, vector<64x256xbf16>
    %cst = arith.constant dense<0.000000e+00> : vector<16x256xf32>
    %3 = tpu.matmul %1, %2, %cst {dimension_numbers = #tpu.dot_dimension_numbers<[1], [0], [0], [1], [0, 0, 1, 1], [], []>} : vector<16x64xbf16>, vector<64x256xbf16>, vector<16x256xf32> -> vector<16x256xf32>
    %c0_4 = arith.constant 0 : index
    %c1 = arith.constant 1 : index
    %c0_5 = arith.constant 0 : index
    %4 = vector.load %arg3[%c0_4, %c1, %c0_5] : memref<1x32x64xbf16, #tpu.memory_space<vmem>>, vector<1x16x64xbf16>
    %5 = vector.shape_cast %4 : vector<1x16x64xbf16> to vector<16x64xbf16>
    %c64 = arith.constant 64 : index
    %c0_6 = arith.constant 0 : index
    %6 = vector.load %arg4[%c64, %c0_6] : memref<256x256xbf16, #tpu.memory_space<vmem>>, vector<64x256xbf16>
    %cst_7 = arith.constant dense<0.000000e+00> : vector<16x256xf32>
    %7 = tpu.matmul %5, %6, %cst_7 {dimension_numbers = #tpu.dot_dimension_numbers<[1], [0], [0], [1], [0, 0, 1, 1], [], []>} : vector<16x64xbf16>, vector<64x256xbf16>, vector<16x256xf32> -> vector<16x256xf32>
    %8 = arith.addf %3, %7 : vector<16x256xf32>
    %c0_8 = arith.constant 0 : index
    %c2 = arith.constant 2 : index
    %c0_9 = arith.constant 0 : index
    %9 = vector.load %arg3[%c0_8, %c2, %c0_9] : memref<1x32x64xbf16, #tpu.memory_space<vmem>>, vector<1x16x64xbf16>
    %10 = vector.shape_cast %9 : vector<1x16x64xbf16> to vector<16x64xbf16>
    %c128 = arith.constant 128 : index
    %c0_10 = arith.constant 0 : index
    %11 = vector.load %arg4[%c128, %c0_10] : memref<256x256xbf16, #tpu.memory_space<vmem>>, vector<64x256xbf16>
    %cst_11 = arith.constant dense<0.000000e+00> : vector<16x256xf32>
    %12 = tpu.matmul %10, %11, %cst_11 {dimension_numbers = #tpu.dot_dimension_numbers<[1], [0], [0], [1], [0, 0, 1, 1], [], []>} : vector<16x64xbf16>, vector<64x256xbf16>, vector<16x256xf32> -> vector<16x256xf32>
    %13 = arith.addf %8, %12 : vector<16x256xf32>
    %c0_12 = arith.constant 0 : index
    %c3 = arith.constant 3 : index
    %c0_13 = arith.constant 0 : index
    %14 = vector.load %arg3[%c0_12, %c3, %c0_13] : memref<1x32x64xbf16, #tpu.memory_space<vmem>>, vector<1x16x64xbf16>
    %15 = vector.shape_cast %14 : vector<1x16x64xbf16> to vector<16x64xbf16>
    %c192 = arith.constant 192 : index
    %c0_14 = arith.constant 0 : index
    %16 = vector.load %arg4[%c192, %c0_14] : memref<256x256xbf16, #tpu.memory_space<vmem>>, vector<64x256xbf16>
    %cst_15 = arith.constant dense<0.000000e+00> : vector<16x256xf32>
    %17 = tpu.matmul %15, %16, %cst_15 {dimension_numbers = #tpu.dot_dimension_numbers<[1], [0], [0], [1], [0, 0, 1, 1], [], []>} : vector<16x64xbf16>, vector<64x256xbf16>, vector<16x256xf32> -> vector<16x256xf32>
    %18 = arith.addf %13, %17 : vector<16x256xf32>
    %c0_16 = arith.constant 0 : index
    %c0_17 = arith.constant 0 : index
    %c0_18 = arith.constant 0 : index
    %19 = vector.load %arg5[%c0_16, %c0_17, %c0_18] : memref<1x16x256xf32, #tpu.memory_space<vmem>>, vector<1x16x256xf32>
    %20 = vector.shape_cast %19 : vector<1x16x256xf32> to vector<16x256xf32>
    %21 = vector.shape_cast %18 : vector<16x256xf32> to vector<1x16x256xf32>
    tpu.vector_store %arg5[%c0_16, %c0_17, %c0_18], %21 {strides = array<i32>} : memref<1x16x256xf32, #tpu.memory_space<vmem>>, vector<1x16x256xf32>,
    return
  }
  func.func @transform_0(%arg0: i32, %arg1: i32, %arg2: i32) -> (i32, i32, i32) {
    %c0_i32 = arith.constant 0 : i32
    %c0_i32_0 = arith.constant 0 : i32
    %c0_i32_1 = arith.constant 0 : i32
    return %arg0, %c0_i32, %c0_i32_0 : i32, i32, i32
  }
  func.func @transform_1(%arg0: i32, %arg1: i32, %arg2: i32) -> (i32, i32) {
    %c0_i32 = arith.constant 0 : i32
    %c0_i32_0 = arith.constant 0 : i32
    return %c0_i32, %arg1 : i32, i32
  }
  func.func @transform_2(%arg0: i32, %arg1: i32, %arg2: i32) -> (i32, i32, i32) {
    %c0_i32 = arith.constant 0 : i32
    return %arg0, %arg2, %arg1 : i32, i32, i32
  }
}

</mosaic_0001>

<bundles_post_ra>
// kernel: stft_pallas.1
= control target key start
LH: loop header
LB: loop body
LE: loop exit
PB: predicated region body
PF: predicated region fallthrough
CT: control target
= control target key end

     0   :  { %s953_s9 = smov 0   ;;  %s955_s10 = smov 0   ;;  %s1106_s0 = inlined_call_operand.vmem [shape: bf16[4,32,64], index: 0, kind: input, shape index: {}]   ;;  %s1107_s1 = inlined_call_operand.vmem [shape: bf16[256,256], index: 1, kind: input, shape index: {}]   ;;  %s1108_s2 = inlined_call_operand.vmem [shape: f32[4,16,256], index: 2, kind: output, shape index: {}]  }
   0x1   :  { %s957_s11 = smov 0  }
   0x2 LB: > { %s31_s12 = sadd.s32 1, %s931_s10  ;;  %p775_p0 = scmp.ge.s32.totalorder %s935_s11, 1  ;;  %s935_s11 = sphi %s957_s11, %s12_s11   ;;  %s931_s10 = sphi %s955_s10, %s1110_s10   ;;  %s927_s9 = sphi %s953_s9, %s1109_s9  }
   0x3   : > { %p33_p1 = scmp.ge.s32.totalorder %s31_s12, 4  ;;  %p146_p2 = scmp.lt.s32.totalorder %s935_s11, 5 }
   0x5   : > { %s1112_s12 = smov (%p33_p1, %s31_s12), 0  ;;  %p147_p3 = pnand %p775_p0, %p146_p2 }
   0x6   : > { %v861_v0 = vld [vmem:[%s1107_s1 + $0x44] ss:$8 sps:$4 sm:$0xff] (!%p147_p3)   ;;  %p182_p4 = scmp.lt.s32.totalorder (!%p147_p3), %s927_s9, 3  ;;  %v937_v2 = vmov (!%p147_p3), 0   ;;  %v865_v3 = vld [vmem:[%s1107_s1 + $0x40] ss:$8 sps:$4 sm:$0xff] (!%p147_p3)  }
   0x7   : > { %150 = sbr.rel (%p147_p3) target bundleno = 261 (0x105), region = 28  ;;  %v863_v1 = vld [vmem:[%s1107_s1 + $0x84] ss:$8 sps:$4 sm:$0xff] (!%p147_p3)   ;;  %326 = vmatprep.mubr.bf16.mxu1 (!%p147_p3), %v937_v2  ;;  %513 = vmatprep.mubr.bf16.mxu0 (!%p147_p3), %v937_v2  ;;  %v866_v4 = vld [vmem:[%s1107_s1 + $0x80] ss:$8 sps:$4 sm:$0xff] (!%p147_p3)   ;;  %vm290_vm0 = vcmask (!%p147_p3), 523264  }
   0x8   : > { %294 = vmatprep.subr.bf16.mxu1 (!%p147_p3), %v861_v0  ;;  %481 = vmatprep.subr.bf16.mxu0 (!%p147_p3), %v863_v1  ;;  %v867_v5 = vld [vmem:[%s1107_s1 + $0x54] ss:$8 sps:$4 sm:$0xff] (!%p147_p3)   ;;  %v871_v7 = vld [vmem:[%s1107_s1 + $0x50] ss:$8 sps:$4 sm:$0xff] (!%p147_p3)   ;;  %v873_v9 = vld [vmem:[%s1107_s1 + $0x64] ss:$8 sps:$4 sm:$0xff] (!%p147_p3)  }
   0x9   : > { %295 = vmatpush1.bf16.msra.mxu1 (!%p147_p3), %v865_v3  ;;  %482 = vmatpush1.bf16.msra.mxu0 (!%p147_p3), %v866_v4  ;;  %v869_v6 = vld [vmem:[%s1107_s1 + $0x94] ss:$8 sps:$4 sm:$0xff] (!%p147_p3)   ;;  %v872_v8 = vld [vmem:[%s1107_s1 + $0x90] ss:$8 sps:$4 sm:$0xff] (!%p147_p3)   ;;  %v875_v10 = vld [vmem:[%s1107_s1 + $0xa4] ss:$8 sps:$4 sm:$0xff] (!%p147_p3)  }
   0xa   : > { %296 = vmatprep.subr.bf16.mxu1 (!%p147_p3), %v867_v5  ;;  %483 = vmatprep.subr.bf16.mxu0 (!%p147_p3), %v869_v6  ;;  %v877_v11 = vld [vmem:[%s1107_s1 + $0x60] ss:$8 sps:$4 sm:$0xff] (!%p147_p3)   ;;  %v879_v13 = vld [vmem:[%s1107_s1 + $0x74] ss:$8 sps:$4 sm:$0xff] (!%p147_p3)   ;;  %v883_v15 = vld [vmem:[%s1107_s1 + $0x70] ss:$8 sps:$4 sm:$0xff] (!%p147_p3)  }
   0xb   : > { %v878_v12 = vld [vmem:[%s1107_s1 + $0xa0] ss:$8 sps:$4 sm:$0xff] (!%p147_p3)   ;;  %v881_v14 = vld [vmem:[%s1107_s1 + $0xb4] ss:$8 sps:$4 sm:$0xff] (!%p147_p3)   ;;  %v884_v16 = vld [vmem:[%s1107_s1 + $0xb0] ss:$8 sps:$4 sm:$0xff] (!%p147_p3)  }
   0xc   : > { %v887_v17 = vld [vmem:[%s1107_s1 + $0x4] ss:$8 sps:$4 sm:$0xff] (!%p147_p3)   ;;  %v888_v28 = vld [vmem:[%s1107_s1 + $0xc0] ss:$8 sps:$4 sm:$0xff] (!%p147_p3)   ;;  %vm434_vm1 = vcmask (!%p147_p3), 1046528  }
   0xd   : > { %297 = vmatpush1.bf16.msra.mxu1 (!%p147_p3), %v871_v7  ;;  %484 = vmatpush1.bf16.msra.mxu0 (!%p147_p3), %v872_v8  ;;  %v890_v18 = vld [vmem:[%s1107_s1 + $0xc4] ss:$8 sps:$4 sm:$0xff] (!%p147_p3)   ;;  %vm237_vm2 = vsmask.f32 (!%p147_p3), 7424  ;;  %v899_v33 = vld [vmem:[%s1107_s1 + $0xd4] ss:$8 sps:$4 sm:$0xff] (!%p147_p3)  }
   0xe   : > { %s1114_s9 = smov (!%p182_p4, %s927_s9), 3  ;;  %298 = vmatprep.subr.bf16.mxu1 %v873_v9  ;;  %485 = vmatprep.subr.bf16.mxu0 %v875_v10  ;;  %v885_v34 = vld [vmem:[%s1107_s1] ss:$8 sps:$4 sm:$0xff]   ;;  %v896_v37 = vld [vmem:[%s1107_s1 + $0x14] ss:$8 sps:$4 sm:$0xff]  }
   0xf   : > { %s822_s3 = sshll.u32 %s1114_s9, 4  ;;  %v897_v39 = vld [vmem:[%s1107_s1 + $0xd0] ss:$8 sps:$4 sm:$0xff]   ;;  %v905_v42 = vld [vmem:[%s1107_s1 + $0xe4] ss:$8 sps:$4 sm:$0xff]   ;;  %s823_s5 = sshll.u32 %s1114_s9, 5 }
  0x10   : > { %s1021_s20 = scalar_lea.vmem %s1106_s0, %s822_s3  ;;  %v894_v43 = vld [vmem:[%s1107_s1 + $0x10] ss:$8 sps:$4 sm:$0xff]   ;;  %v902_v45 = vld [vmem:[%s1107_s1 + $0x24] ss:$8 sps:$4 sm:$0xff]   ;;  %v903_v46 = vld [vmem:[%s1107_s1 + $0xe0] ss:$8 sps:$4 sm:$0xff]   ;;  %s206_s8 = scalar_lea.vmem %s1108_s2, %s823_s5 }
  0x11   : > { %299 = vmatpush1.bf16.msra.mxu1 %v877_v11  ;;  %486 = vmatpush1.bf16.msra.mxu0 %v878_v12  ;;  %v210_v19 = vld [vmem:[%s1021_s20] sm:$0xf]  ;;  %v211_v20 = vld [vmem:[%s1021_s20 + $0x4] sm:$0xf]  ;;  %v911_v51 = vld [vmem:[%s1107_s1 + $0xf4] ss:$8 sps:$4 sm:$0xff]  }
  0x12   : > { %300 = vmatprep.subr.bf16.mxu1 %v879_v13  ;;  %487 = vmatprep.subr.bf16.mxu0 %v881_v14  ;;  %v1037_v21 = vcombine.low %v210_v19, %v211_v20  ;;  %v892_v22 = vld [vmem:[%s1021_s20 + $0x8] ss:$0 sps:$4 sm:$0x11]   ;;  %v422_v23 = vld [vmem:[%s1021_s20] sm:$0xe] }
  0x13   : > { %v246_v26 = vshll.u32 %v892_v22, 16  ;;  %v800_v27 = vcombine.low %v422_v23, %v211_v20  ;;  %v436_v29 = vrot.slane %v892_v22, 1  ;;  %v912_v44 = vld [vmem:[%s1021_s20 + $0x8] ss:$0 sps:$4 sm:$0x33]  }
  0x14   : > { %v239_v24 = vshrl.u32 %v1037_v21, 16  ;;  %v241_v25 = vshll.u32 %v1037_v21, 16  ;;  %v550_v49 = vshrl.u32 %v912_v44, 16  ;;  %v553_v50 = vshll.u32 %v912_v44, 16  ;;  %v900_v52 = vld [vmem:[%s1107_s1 + $0x20] ss:$8 sps:$4 sm:$0xff]  }
  0x15   : > { %301 = vmatpush1.bf16.msra.mxu1 %v883_v15  ;;  %488 = vmatpush1.bf16.msra.mxu0 %v884_v16  ;;  %v248_v31 = vrot.slane %v246_v26, 1  ;;  %v435_v32 = vrot.slane %v800_v27, 1  ;;  %v542_v40 = vshrl.u32 %v800_v27, 16  ;;  %v545_v41 = vshll.u32 %v800_v27, 16  ;;  %v908_v55 = vld [vmem:[%s1107_s1 + $0x34] ss:$8 sps:$4 sm:$0xff]  }
  0x16   : > { %379 = vmatprep.subr.bf16.mxu1 %v887_v17  ;;  %601 = vmatprep.subr.bf16.mxu0 %v890_v18  ;;  %v243_v30 = vrot.slane %v241_v25, 1  ;;  %v552_v53 = vrot.slane %v550_v49, 1  ;;  %v555_v54 = vrot.slane %v553_v50, 2  ;;  %v909_v56 = vld [vmem:[%s1107_s1 + $0xf0] ss:$8 sps:$4 sm:$0xff]  }
  0x17   : > { %v437_v36 = vsel %vm434_vm1, %v435_v32, %v436_v29  ;;  %v544_v47 = vrot.slane %v542_v40, 1  ;;  %v547_v48 = vrot.slane %v545_v41, 2  ;;  %vm540_vm3 = vsmask.f32 6400  ;;  %v906_v59 = vld [vmem:[%s1107_s1 + $0x30] ss:$8 sps:$4 sm:$0xff]  }
  0x18   : > { %v244_v35 = vor.u32 %v243_v30, %v239_v24  ;;  %809 = vmatmul.mubr.msk.bf16.vlgmr.msra.gmra.mrb[0].mxu0 %vm290_vm0, %v437_v36  ;;  %v556_v58 = vor.u32 %v555_v54, %v552_v53 }
  0x19   : > { %602 = vmatpush1.bf16.msra.mxu0 %v888_v28  ;;  %633 = vmatprep.mubr.bf16.mxu0 %v937_v2  ;;  %v548_v57 = vor.u32 %v547_v48, %v544_v47 }
  0x1a   : > { %v249_v38 = vsel %vm237_vm2, %v244_v35, %v248_v31  ;;  %603 = vmatprep.subr.bf16.mxu0 %v899_v33 }
  0x1b   : > { %790 = vmatmul.mubr.msk.bf16.vlgmr.msra.gmra.mrb[0].mxu1 %vm290_vm0, %v249_v38  ;;  %v557_v60 = vsel %vm540_vm3, %v548_v57, %v556_v58 }
  0x1c   : > { %380 = vmatpush1.bf16.msra.mxu1 %v885_v34  ;;  %411 = vmatprep.mubr.bf16.mxu1 %v937_v2 }
  0x1d   : > { %381 = vmatprep.subr.bf16.mxu1 %v896_v37  ;;  %604 = vmatpush1.bf16.msra.mxu0 %v897_v39 }
  0x1e   : > { %605 = vmatprep.subr.bf16.mxu0 %v905_v42 }
  0x20   : > { %382 = vmatpush1.bf16.msra.mxu1 %v894_v43 }
  0x21   : > { %383 = vmatprep.subr.bf16.mxu1 %v902_v45  ;;  %606 = vmatpush1.bf16.msra.mxu0 %v903_v46 }
  0x22   : > { %607 = vmatprep.subr.bf16.mxu0 %v911_v51 }
  0x24   : > { %384 = vmatpush1.bf16.msra.mxu1 %v900_v52 }
  0x25   : > { %385 = vmatprep.subr.bf16.mxu1 %v908_v55  ;;  %608 = vmatpush1.bf16.msra.mxu0 %v909_v56 }
  0x28   : > { %386 = vmatpush1.bf16.msra.mxu1 %v906_v59  ;;  %819 = vmatmul.mubr.msk.bf16.vlgmr.msra.gmra.mrb[0].mxu0 %vm290_vm0, %v557_v60 }
  0x2b   : > { %799 = vmatmul.mubr.msk.bf16.vlgmr.msra.gmra.mrb[0].mxu1 %vm290_vm0, %v1037_v21 }
  0xfb   : > { %v635_v61 = vpop.f32.mrb[0].mxu0 }
  0xfc   : > { %v637_v62 = vpop.f32.mrb[1].mxu0 }
  0xfd   : > { %v639_v0 = vpop.f32.mrb[2].mxu0 }
  0xfe   : > { %v413_v63 = vpop.f32.mrb[0].mxu1  ;;  %v641_v3 = vpop.f32.mrb[3].mxu0 }
  0xff   : > { %v824_v1 = vadd.f32 %v635_v61, %v413_v63  ;;  %v415_v2 = vpop.f32.mrb[1].mxu1 }
 0x100   : > { %v825_v4 = vadd.f32 %v637_v62, %v415_v2  ;;  %v417_v5 = vpop.f32.mrb[2].mxu1 }
 0x101   : > { %648 = vst [vmem:[%s206_s8] sm:$0xff] %v824_v1  ;;  %v826_v6 = vadd.f32 %v639_v0, %v417_v5  ;;  %v419_v7 = vpop.f32.mrb[3].mxu1 }
 0x102   : > { %649 = vst [vmem:[%s206_s8 + $0x8] sm:$0xff] %v825_v4  ;;  %v827_v8 = vadd.f32 %v641_v3, %v419_v7 }
 0x103   : > { %650 = vst [vmem:[%s206_s8 + $0x10] sm:$0xff] %v826_v6 }
 0x104   : > { %651 = vst [vmem:[%s206_s8 + $0x18] sm:$0xff] %v827_v8 }
 0x105 PF: > { %s12_s11 = sadd.s32 1, %s935_s11   ;;  %s1109_s9 = smov %s931_s10 }
 0x106   : > { %p9_p5 = scmp.ge.s32.totalorder %s12_s11, 6   ;;  %s1110_s10 = smov %s1112_s12 }
 0x108   :  { %11 = sbr.rel (!%p9_p5) target bundleno = 2 (0x2), region = 61 }

</bundles_post_ra>
